<compile_context>
chip_gen: v6e
topology: v6e:2x2x1
jax: 0.10.0
libtpu: 0.0.40
codegen_flags: <defaults>
</compile_context>

<pallas_src>
import jax
import jax.numpy as jnp
from jax.experimental import pallas as pl
from jax.experimental.pallas import tpu as pltpu

M = 256
X0 = 2 * M        # 512
X1 = 2 ** 8       # 256
X2 = 2 ** 5       # 32


def _mlp_kernel(x_ref, w1_ref, b1_ref, w2_ref, b2_ref, w3_ref, b3_ref, o_ref):
    # Layer 1: bf16 x bf16 -> f32 accumulate on the MXU, bias + ReLU in f32.
    h1 = jnp.dot(x_ref[...], w1_ref[...], preferred_element_type=jnp.float32)
    h1 = jnp.maximum(h1 + b1_ref[...], 0.0)
    # Layer 2: bf16 operands, f32 accumulate, bias + ReLU.
    h2 = jnp.dot(h1.astype(jnp.bfloat16), w2_ref[...],
                 preferred_element_type=jnp.float32)
    h2 = jnp.maximum(h2 + b2_ref[...], 0.0)
    # Layer 3 as a lane-reduce: (tm, 32) * (1, 32) summed over lanes -> (tm,),
    # written as one lane-dense (1, tm) output row (unmasked stores); the
    # reduce / relayout lands on the otherwise-idle XLU.
    h3 = jnp.sum(h2 * w3_ref[...], axis=-1) + b3_ref[0, 0]
    o_ref[0, :] = h3.astype(o_ref.dtype)


def halfkp_mlp(x, w1, b1, w2, b2, w3, b3, *, tm=512):
    """x: (B, 512) f32.  Weights are (in_features, out_features); biases (1, out).
    Returns (B, 1) f32.

    tm: batch tile.  Must be a multiple of 128; 256/512/1024 also line up with
    the v6e/v7x 256-row MXU.  Batch is zero-padded to a multiple of tm.
    """
    assert tm % 128 == 0, "batch tile must be a multiple of 128"
    B = x.shape[0]
    n_tiles = pl.cdiv(B, tm)
    b_pad = n_tiles * tm
    if b_pad != B:
        x = jnp.pad(x, ((0, b_pad - B), (0, 0)))

    # bf16 MXU operands (accumulation stays f32 inside the kernel).
    xb = x.astype(jnp.bfloat16)
    w1b = w1.astype(jnp.bfloat16)
    w2b = w2.astype(jnp.bfloat16)
    w3_row = w3.reshape(1, X2).astype(jnp.float32)   # (1, 32) for the lane-reduce
    b3_s = b3.reshape(1, 1).astype(jnp.float32)      # scalar, lives in SMEM

    full = lambda i: (0, 0)  # weights/biases: same full block at every grid step
    out = pl.pallas_call(
        _mlp_kernel,
        out_shape=jax.ShapeDtypeStruct((1, b_pad), jnp.float32),
        grid_spec=pltpu.PrefetchScalarGridSpec(
            num_scalar_prefetch=0,
            grid=(n_tiles,),
            in_specs=[
                pl.BlockSpec((tm, X0), lambda i: (i, 0)),            # x tile (bf16)
                pl.BlockSpec((X0, X1), full),                        # w1 (bf16)
                pl.BlockSpec((1, X1), full),                         # b1 (f32)
                pl.BlockSpec((X1, X2), full),                        # w2 (bf16)
                pl.BlockSpec((1, X2), full),                         # b2 (f32)
                pl.BlockSpec((1, X2), full),                         # w3 row (f32)
                pl.BlockSpec(memory_space=pltpu.MemorySpace.SMEM),   # b3 scalar
            ],
            out_specs=pl.BlockSpec((1, tm), lambda i: (0, i)),       # lane-dense slab
        ),
        compiler_params=pltpu.CompilerParams(
            dimension_semantics=("parallel",)),
    )(xb, w1b, b1, w2b, b2, w3_row, b3_s)

    return out.reshape(b_pad, 1)[:B]


def init_params(key):
    """Deterministic PyTorch-style init: U(-1/sqrt(fan_in), 1/sqrt(fan_in))."""
    ks = jax.random.split(key, 6)

    def lin(kw, kb, fan_in, fan_out):
        bound = 1.0 / jnp.sqrt(fan_in)
        w = jax.random.uniform(kw, (fan_in, fan_out), jnp.float32, -bound, bound)
        b = jax.random.uniform(kb, (1, fan_out), jnp.float32, -bound, bound)
        return w, b

    w1, b1 = lin(ks[0], ks[1], X0, X1)
    w2, b2 = lin(ks[2], ks[3], X1, X2)
    w3, b3 = lin(ks[4], ks[5], X2, 1)
    return w1, b1, w2, b2, w3, b3


def reference_f32(x, w1, b1, w2, b2, w3, b3):
    """Pure f32 module semantics."""
    h1 = jnp.maximum(x @ w1 + b1, 0.0)
    h2 = jnp.maximum(h1 @ w2 + b2, 0.0)
    return h2 @ w3 + b3


def reference_bf16(x, w1, b1, w2, b2, w3, b3):
    """Reference with the same bf16-operand / f32-accumulate recipe as the kernel."""
    h1 = jnp.dot(x.astype(jnp.bfloat16), w1.astype(jnp.bfloat16),
                 preferred_element_type=jnp.float32)
    h1 = jnp.maximum(h1 + b1, 0.0)
    h2 = jnp.dot(h1.astype(jnp.bfloat16), w2.astype(jnp.bfloat16),
                 preferred_element_type=jnp.float32)
    h2 = jnp.maximum(h2 + b2, 0.0)
    return jnp.sum(h2 * w3.reshape(1, X2), axis=-1, keepdims=True) + b3


if __name__ == "__main__":
    key = jax.random.PRNGKey(0)
    kx, kp = jax.random.split(key)

    B = 200  # deliberately not a multiple of the tile -> exercises padding path
    x = jax.random.normal(kx, (B, X0), jnp.float32)
    params = init_params(kp)

    # Small tile for the demo so the grid has >1 step; production default is 512.
    out = jax.block_until_ready(halfkp_mlp(x, *params, tm=128))
    assert out.shape == (B, 1)

    # Tight check against a reference with matched bf16 operands.
    ref = reference_bf16(x, *params)
    assert jnp.allclose(out, ref, atol=2e-3, rtol=2e-3), \
        float(jnp.max(jnp.abs(out - ref)))

    # Sanity vs the pure-f32 module semantics (bf16 operands => relaxed tol).
    ref32 = reference_f32(x, *params)
    assert jnp.allclose(out, ref32, atol=3e-2, rtol=3e-2), \
        float(jnp.max(jnp.abs(out - ref32)))

    print("KERNEL_OK")
</pallas_src>

<mosaic_0001>
module attributes {stable_mosaic.version = 11 : i64} {
  func.func @_mlp_kernel(%arg0: i32, %arg1: memref<128x512xbf16, #tpu.memory_space<vmem>>, %arg2: memref<512x256xbf16, #tpu.memory_space<vmem>>, %arg3: memref<1x256xf32, #tpu.memory_space<vmem>>, %arg4: memref<256x32xbf16, #tpu.memory_space<vmem>>, %arg5: memref<1x32xf32, #tpu.memory_space<vmem>>, %arg6: memref<1x32xf32, #tpu.memory_space<vmem>>, %arg7: memref<1x1xf32, #tpu.memory_space<smem>>, %arg8: memref<1x128xf32, #tpu.memory_space<vmem>>) attributes {dimension_semantics = [#tpu.dimension_semantics<parallel>], iteration_bounds = array<i64: 2>, scalar_prefetch = 0 : i64, scratch_operands = 0 : i64, tpu.core_type = #tpu.core_type<tc>, window_params = [{transform_indices = @transform_0, window_bounds = array<i64: 128, 512>}, {pipeline_mode = #tpu.pipeline_mode<synchronous>, transform_indices = @transform_1, window_bounds = array<i64: 512, 256>}, {pipeline_mode = #tpu.pipeline_mode<synchronous>, transform_indices = @transform_2, window_bounds = array<i64: 1, 256>}, {pipeline_mode = #tpu.pipeline_mode<synchronous>, transform_indices = @transform_3, window_bounds = array<i64: 256, 32>}, {pipeline_mode = #tpu.pipeline_mode<synchronous>, transform_indices = @transform_4, window_bounds = array<i64: 1, 32>}, {pipeline_mode = #tpu.pipeline_mode<synchronous>, transform_indices = @transform_5, window_bounds = array<i64: 1, 32>}, {transform_indices = @transform_6, window_bounds = array<i64: 1, 1>}, {transform_indices = @transform_7, window_bounds = array<i64: 1, 128>}]} {
    %c0 = arith.constant 0 : index
    %c0_0 = arith.constant 0 : index
    %0 = vector.load %arg1[%c0, %c0_0] : memref<128x512xbf16, #tpu.memory_space<vmem>>, vector<128x512xbf16>
    %c0_1 = arith.constant 0 : index
    %c0_2 = arith.constant 0 : index
    %1 = vector.load %arg2[%c0_1, %c0_2] : memref<512x256xbf16, #tpu.memory_space<vmem>>, vector<512x256xbf16>
    %cst = arith.constant dense<0.000000e+00> : vector<128x256xf32>
    %2 = tpu.matmul %0, %1, %cst {dimension_numbers = #tpu.dot_dimension_numbers<[1], [0], [0], [1], [0, 0, 1, 1], [], []>} : vector<128x512xbf16>, vector<512x256xbf16>, vector<128x256xf32> -> vector<128x256xf32>
    %c0_3 = arith.constant 0 : index
    %c0_4 = arith.constant 0 : index
    %3 = vector.load %arg3[%c0_3, %c0_4] : memref<1x256xf32, #tpu.memory_space<vmem>>, vector<1x256xf32>
    %4 = vector.broadcast %3 : vector<1x256xf32> to vector<128x256xf32>
    %5 = arith.addf %2, %4 : vector<128x256xf32>
    %cst_5 = arith.constant 0.000000e+00 : f32
    %6 = vector.broadcast %cst_5 : f32 to vector<128x256xf32>
    %7 = arith.maximumf %5, %6 : vector<128x256xf32>
    %8 = arith.truncf %7 : vector<128x256xf32> to vector<128x256xbf16>
    %c0_6 = arith.constant 0 : index
    %c0_7 = arith.constant 0 : index
    %9 = vector.load %arg4[%c0_6, %c0_7] : memref<256x32xbf16, #tpu.memory_space<vmem>>, vector<256x32xbf16>
    %cst_8 = arith.constant dense<0.000000e+00> : vector<128x32xf32>
    %10 = tpu.matmul %8, %9, %cst_8 {dimension_numbers = #tpu.dot_dimension_numbers<[1], [0], [0], [1], [0, 0, 1, 1], [], []>} : vector<128x256xbf16>, vector<256x32xbf16>, vector<128x32xf32> -> vector<128x32xf32>
    %c0_9 = arith.constant 0 : index
    %c0_10 = arith.constant 0 : index
    %11 = vector.load %arg5[%c0_9, %c0_10] : memref<1x32xf32, #tpu.memory_space<vmem>>, vector<1x32xf32>
    %12 = vector.broadcast %11 : vector<1x32xf32> to vector<128x32xf32>
    %13 = arith.addf %10, %12 : vector<128x32xf32>
    %cst_11 = arith.constant 0.000000e+00 : f32
    %14 = vector.broadcast %cst_11 : f32 to vector<128x32xf32>
    %15 = arith.maximumf %13, %14 : vector<128x32xf32>
    %c0_12 = arith.constant 0 : index
    %c0_13 = arith.constant 0 : index
    %16 = vector.load %arg6[%c0_12, %c0_13] : memref<1x32xf32, #tpu.memory_space<vmem>>, vector<1x32xf32>
    %17 = vector.broadcast %16 : vector<1x32xf32> to vector<128x32xf32>
    %18 = arith.mulf %15, %17 : vector<128x32xf32>
    %cst_14 = arith.constant dense<0.000000e+00> : vector<128xf32>
    %19 = vector.multi_reduction <add>, %18, %cst_14 [1] : vector<128x32xf32> to vector<128xf32>
    %c0_15 = arith.constant 0 : index
    %c0_16 = arith.constant 0 : index
    %20 = memref.load %arg7[%c0_15, %c0_16] : memref<1x1xf32, #tpu.memory_space<smem>>
    %21 = vector.broadcast %20 : f32 to vector<128xf32>
    %22 = arith.addf %19, %21 : vector<128xf32>
    %c0_17 = arith.constant 0 : index
    %c0_18 = arith.constant 0 : index
    %23 = vector.load %arg8[%c0_17, %c0_18] : memref<1x128xf32, #tpu.memory_space<vmem>>, vector<1x128xf32>
    %24 = vector.shape_cast %23 : vector<1x128xf32> to vector<128xf32>
    %25 = vector.shape_cast %22 : vector<128xf32> to vector<1x128xf32>
    tpu.vector_store %arg8[%c0_17, %c0_18], %25 {strides = array<i32>} : memref<1x128xf32, #tpu.memory_space<vmem>>, vector<1x128xf32>,
    return
  }
  func.func @transform_0(%arg0: i32) -> (i32, i32) {
    %c0_i32 = arith.constant 0 : i32
    %c0_i32_0 = arith.constant 0 : i32
    return %arg0, %c0_i32 : i32, i32
  }
  func.func @transform_1(%arg0: i32) -> (i32, i32) {
    %c0_i32 = arith.constant 0 : i32
    %c0_i32_0 = arith.constant 0 : i32
    %c0_i32_1 = arith.constant 0 : i32
    return %c0_i32, %c0_i32_0 : i32, i32
  }
  func.func @transform_2(%arg0: i32) -> (i32, i32) {
    %c0_i32 = arith.constant 0 : i32
    %c0_i32_0 = arith.constant 0 : i32
    %c0_i32_1 = arith.constant 0 : i32
    return %c0_i32, %c0_i32_0 : i32, i32
  }
  func.func @transform_3(%arg0: i32) -> (i32, i32) {
    %c0_i32 = arith.constant 0 : i32
    %c0_i32_0 = arith.constant 0 : i32
    %c0_i32_1 = arith.constant 0 : i32
    return %c0_i32, %c0_i32_0 : i32, i32
  }
  func.func @transform_4(%arg0: i32) -> (i32, i32) {
    %c0_i32 = arith.constant 0 : i32
    %c0_i32_0 = arith.constant 0 : i32
    %c0_i32_1 = arith.constant 0 : i32
    return %c0_i32, %c0_i32_0 : i32, i32
  }
  func.func @transform_5(%arg0: i32) -> (i32, i32) {
    %c0_i32 = arith.constant 0 : i32
    %c0_i32_0 = arith.constant 0 : i32
    %c0_i32_1 = arith.constant 0 : i32
    return %c0_i32, %c0_i32_0 : i32, i32
  }
  func.func @transform_6(%arg0: i32) -> (i32, i32) {
    %c0_i32 = arith.constant 0 : i32
    %c0_i32_0 = arith.constant 0 : i32
    %c0_i32_1 = arith.constant 0 : i32
    return %c0_i32, %c0_i32_0 : i32, i32
  }
  func.func @transform_7(%arg0: i32) -> (i32, i32) {
    %c0_i32 = arith.constant 0 : i32
    %c0_i32_0 = arith.constant 0 : i32
    return %c0_i32, %arg0 : i32, i32
  }
}

</mosaic_0001>

<bundles_post_ra>
// kernel: tpu_custom_call.1
= control target key start
LH: loop header
LB: loop body
LE: loop exit
PB: predicated region body
PF: predicated region fallthrough
CT: control target
= control target key end

     0   :  { %s2753_s0 = inlined_call_operand.hbm [shape: bf16[256,512], index: 0, kind: input, shape index: {}]   ;;  %s2754_s1 = inlined_call_operand.hbm [shape: bf16[512,256], index: 1, kind: input, shape index: {}]   ;;  %s2755_s2 = inlined_call_operand.vmem [shape: f32[1,256], index: 2, kind: input, shape index: {}]   ;;  %s2756_s3 = inlined_call_operand.vmem [shape: bf16[256,32], index: 3, kind: input, shape index: {}]   ;;  %s2757_s4 = inlined_call_operand.vmem [shape: f32[1,32], index: 4, kind: input, shape index: {}]   ;;  %s2758_s5 = inlined_call_operand.vmem [shape: f32[1,32], index: 5, kind: input, shape index: {}]   ;;  %s2759_s6 = inlined_call_operand.<no memory space> [shape: f32[1,1], index: 6, kind: input, shape index: {}]   ;;  %s2760_s7 = inlined_call_operand.hbm [shape: f32[1,256], index: 7, kind: output, shape index: {}]  }
   0x1   :  { %12 = sst [smem:[#allocation2]] %s2759_s6 }
   0x2   :  { %13 = vsyncpa [#allocation4], 0 }
   0x3   :  { %15 = vsyncpa [#allocation4 + $0x1], 0 }
   0x4   :  { %16 = vsyncpa [#allocation7], 0 }
   0x5   :  { %17 = vsyncpa [#allocation5], 0 }
   0x6   :  { %19 = vsyncpa [#allocation5 + $0x1], 0  ;;  %s2338_s26 = smov 0   ;;  %s2340_s27 = smov 0  }
   0x7   :  { %s2342_s28 = smov 0   ;;  %s2344_s29 = smov 0  }
   0x8 LB: > { %s2359_s6 = sadd.s32 4294967295, %s2286_s29   ;;  %s1733_s30 = sadd.s32 4294967294, %s2286_s29   ;;  %s2286_s29 = sphi %s2344_s29, %s2782_s29   ;;  %s2282_s28 = sphi %s2342_s28, %s2781_s28   ;;  %s2278_s27 = sphi %s2340_s27, %s2780_s27   ;;  %s2274_s26 = sphi %s2338_s26, %s2779_s26  }
   0x9   : > { %p45_p0 = scmp.ne.s32.totalorder %s2278_s27, %s2274_s26  ;;  %p2761_p1 = scmp.eq.s32.totalorder %s2359_s6, 0 }
   0xa   : > { %p201_p3 = scmp.eq.s32.totalorder %s1733_s30, 1  ;;  %p1734_p5 = scmp.ge.s32.totalorder %s2286_s29, 1 }
   0xb   : > { %p2368_p4 = por %p2761_p1, %p45_p0  ;;  %p208_p7 = scmp.lt.s32.totalorder %s2286_s29, 3 }
   0xc   : > { %p2373_p6 = por %p201_p3, %p45_p0  ;;  %s2288_s11 = smov [#allocation6]  }
   0xd   : > { %s2765_s8 = scalar_select %p2368_p4, 1, 0 }
   0xe   : > { %s2766_s9 = scalar_select %p2373_p6, 1, 0 }
   0xf   : > { %p2378_p8 = pnand %p1734_p5, %p208_p7  ;;  %s220_s12 = sshll.u32 %s2288_s11, 4  ;;  %s221_s12 = int_to_ptr.vmem [resolvable:$true] %s220_s12 }
  0x10   : > { %s2392_s14 = sadd.s32 1, %s2286_s29   ;;  %s32_s15 = sadd.s32 1, %s2282_s28 }
  0x11   : > { %s2767_s10 = scalar_select %p2378_p8, 1, 0 }
  0x12   : > { %p1951_p9 = pneg %p2378_p8  ;;  %s29_s16 = ssub.s32 %s2286_s29, %s2392_s14 }
  0x13   : > { %s2175_s17 = scalar_lea.vmem %s221_s12, 8192  ;;  %p2183_p5 = scmp.lt.s32.totalorder %s221_s12, %s221_s12 }
  0x14   : > { %p2387_p11 = pnand %p1951_p9, %p2761_p1  ;;  %p2176_p13 = scmp.ne.s32.totalorder %s221_s12, %s2175_s17 }
  0x15   : > { %p2184_p7 = scmp.lt.s32.totalorder %s2175_s17, %s2175_s17 }
  0x16   : > { %p2166_p12 = pneg %p2387_p11 }
  0x17   : > { %p2185_p10 = por %p2184_p7, %p2183_p5 }
  0x18   : > { %p2178_p0 = pnand %p2176_p13, %p2166_p12 }
  0x1a   : > { %p2179_p3 = pneg %p2178_p0 }
  0x1c   : > { %p2186_p2 = pnand %p2185_p10, %p2179_p3 }
  0x1e   : > { %2189 = shalt.err (!%p2186_p2)
}
  0x1f   : > { %s2289_s18 = smov 128   ;;  %s2290_s19 = smov 8  }
  0x20   : > { %1954 = dma.hbm_to_vmem [thread:$0]  (!%p2387_p11), %s2754_s1, 8192, %s221_s12, [#allocation7], %s2289_s18, %s2289_s18, %s2290_s19  }
  0x21   : > { %p30_p9 = scmp.eq.s32.totalorder %s29_s16, 0  ;;  %p39_p12 = scmp.ne.s32.totalorder %s2282_s28, %s2278_s27 }
  0x22   : > { %p40_p10 = scmp.eq.s32.totalorder %s2286_s29, 0  ;;  %p1964_p2 = scmp.lt.s32.totalorder %s2286_s29, 2 }
  0x23   : > { %s2409_s22 = scalar_select %p30_p9, %s2282_s28, %s32_s15  }
  0x24   : > { %p41_p13 = por %p40_p10, %p39_p12  ;;  %p2769_p0 = scmp.eq.s32.totalorder %s2359_s6, 1 }
  0x25   : > { %s249_s24 = sand.u32 1, %s2282_s28   ;;  %s1862_s25 = sshll.u32 %s2286_s29, 12 }
  0x26   : > { %p2413_p3 = por %p2769_p0, %p39_p12  ;;  %s1737_s30 = sshll.u32 %s249_s24, 8 }
  0x27   : > { %s2422_s17 = scalar_lea.hbm %s2753_s0, %s1862_s25  ;;  %s253_s12 = scalar_lea.vmem [#allocation3], %s1737_s30 }
  0x28   : > { %s2770_s23 = scalar_select %p2413_p3, 1, 0 }
  0x29   : > { %s261_s15 = sshll.u32 %s253_s12, 4  ;;  %p2424_p11 = pnand %p1964_p2, %p41_p13  ;;  %s2428_s15 = int_to_ptr.vmem [resolvable:$true] %s261_s15 }
  0x2a   : > { %s2430_s18 = scalar_lea.sflag [#allocation4], %s249_s24  ;;  %s2190_s19 = scalar_lea.hbm %s2422_s17, 4096 }
  0x2b   : > { %p2191_p5 = scmp.ne.s32.totalorder %s2422_s17, %s2190_s19  ;;  %p2192_p7 = pneg %p2424_p11 }
  0x2c   : > { %s2195_s25 = scalar_lea.hbm %s2753_s0, 8192  ;;  %p2196_p10 = scmp.lt.s32.totalorder %s2422_s17, %s2753_s0 }
  0x2d   : > { %p2193_p9 = pnand %p2192_p7, %p2191_p5  ;;  %p2197_p2 = scmp.lt.s32.totalorder %s2195_s25, %s2190_s19 }
  0x2f   : > { %p2194_p12 = pneg %p2193_p9  ;;  %p2198_p13 = por %p2197_p2, %p2196_p10 }
  0x31   : > { %p2199_p0 = pnand %p2198_p13, %p2194_p12 }
  0x33   : > { %2202 = shalt.err (!%p2199_p0)
}
  0x34   : > { %s2203_s24 = scalar_lea.vmem %s2428_s15, 4096  ;;  %s2291_s13 = smov [#allocation3]  }
  0x35   : > { %p2204_p1 = scmp.ne.s32.totalorder %s2428_s15, %s2203_s24  ;;  %s2208_s12 = sshll.u32 %s2291_s13, 4  ;;  %s2209_s12 = int_to_ptr.vmem [resolvable:$false] %s2208_s12 }
  0x36   : > { %s2210_s20 = scalar_lea.vmem %s2209_s12, 8192  ;;  %p2211_p9 = scmp.lt.s32.totalorder %s2428_s15, %s2209_s12 }
  0x37   : > { %p2206_p6 = pnand %p2204_p1, %p2192_p7  ;;  %p2212_p3 = scmp.lt.s32.totalorder %s2210_s20, %s2203_s24 }
  0x39   : > { %p2207_p5 = pneg %p2206_p6  ;;  %p2213_p4 = por %p2212_p3, %p2211_p9 }
  0x3b   : > { %p2214_p8 = pnand %p2213_p4, %p2207_p5 }
  0x3d   : > { %2217 = shalt.err (!%p2214_p8)
}
  0x3e   : > { %s2292_s19 = smov 256   ;;  %s2293_s21 = smov 16  }
  0x3f   : > { %1958 = dma.hbm_to_vmem [thread:$0]  (!%p2424_p11), %s2422_s17, 4096, %s2428_s15, %s2430_s18, %s2292_s19, %s2292_s19, %s2293_s21  }
  0x40   : > { %p2772_p1 = scmp.ne.s32.totalorder %s2767_s10, 0 }
  0x41   : > { %s2454_s25 = sand.u32 (!%p2772_p1), 1, %s2278_s27   ;;  %p2773_p4 = scmp.ne.s32.totalorder (!%p2772_p1), %s2765_s8, 0 }
  0x42   : > { %273 = sbr.rel (%p2772_p1) target bundleno = 768 (0x300), region = 48  ;;  %s1742_s30 = sshll.u32 (!%p2772_p1), %s2454_s25, 8 }
  0x43   : > { %s276_s11 = scalar_lea.sflag (!%p2772_p1), [#allocation4], %s2454_s25  ;;  %s2458_s24 = scalar_lea.vmem (!%p2772_p1), [#allocation3], %s1742_s30 }
  0x47   : > { %2261 = dma.done.wait (%p2773_p4), %s276_s11, 4096  }
  0x48   : > { %2263 = vsyncadd (%p2773_p4), %s276_s11, 4294963200  ;;  %p2774_p6 = scmp.eq.s32.totalorder %s2359_s6, 0 }
  0x4a   : > { %2265 = dma.done.wait (%p2774_p6), [#allocation7], 8192   ;;  %p2775_p8 = pmov %p2774_p6 }
  0x4b   : > { %v2004_v0 = vld [vmem:[#allocation6 + $0x74] ss:$8 sps:$4 sm:$0xff]   ;;  %v2008_v2 = vld [vmem:[#allocation6 + $0x70] ss:$8 sps:$4 sm:$0xff]   ;;  %v2010_v4 = vld [vmem:[#allocation6 + $0x64] ss:$8 sps:$4 sm:$0xff]  }
  0x4c   : > { %2267 = vsyncadd (%p2775_p8), [#allocation7], 4294959104  ;;  %v2006_v1 = vld [vmem:[#allocation6 + $0x174] ss:$8 sps:$4 sm:$0xff]   ;;  %903 = vmatprep.subr.bf16.mxu0 %v2004_v0  ;;  %v2009_v3 = vld [vmem:[#allocation6 + $0x170] ss:$8 sps:$4 sm:$0xff]  }
  0x4d   : > { %1016 = vmatprep.subr.bf16.mxu1 %v2006_v1  ;;  %904 = vmatpush1.bf16.msra.mxu0 %v2008_v2  ;;  %v2012_v5 = vld [vmem:[#allocation6 + $0x164] ss:$8 sps:$4 sm:$0xff]   ;;  %v2014_v6 = vld [vmem:[#allocation6 + $0x60] ss:$8 sps:$4 sm:$0xff]   ;;  %v2016_v8 = vld [vmem:[#allocation6 + $0x54] ss:$8 sps:$4 sm:$0xff]  }
  0x4e   : > { %1017 = vmatpush1.bf16.msra.mxu1 %v2009_v3  ;;  %905 = vmatprep.subr.bf16.mxu0 %v2010_v4  ;;  %v2015_v7 = vld [vmem:[#allocation6 + $0x160] ss:$8 sps:$4 sm:$0xff]   ;;  %v2018_v9 = vld [vmem:[#allocation6 + $0x154] ss:$8 sps:$4 sm:$0xff]   ;;  %v2020_v10 = vld [vmem:[#allocation6 + $0x50] ss:$8 sps:$4 sm:$0xff]  }
  0x4f   : > { %1018 = vmatprep.subr.bf16.mxu1 %v2012_v5  ;;  %v2021_v11 = vld [vmem:[#allocation6 + $0x150] ss:$8 sps:$4 sm:$0xff]   ;;  %v2022_v12 = vld [vmem:[#allocation6 + $0x44] ss:$8 sps:$4 sm:$0xff]   ;;  %v2026_v14 = vld [vmem:[#allocation6 + $0x40] ss:$8 sps:$4 sm:$0xff]  }
  0x50   : > { %v2024_v13 = vld [vmem:[#allocation6 + $0x144] ss:$8 sps:$4 sm:$0xff]   ;;  %v2027_v15 = vld [vmem:[#allocation6 + $0x140] ss:$8 sps:$4 sm:$0xff]   ;;  %v2028_v16 = vld [vmem:[#allocation6 + $0x34] ss:$8 sps:$4 sm:$0xff]  }
  0x51   : > { %906 = vmatpush1.bf16.msra.mxu0 %v2014_v6  ;;  %v2030_v17 = vld [vmem:[#allocation6 + $0x134] ss:$8 sps:$4 sm:$0xff]   ;;  %v2032_v18 = vld [vmem:[#allocation6 + $0x30] ss:$8 sps:$4 sm:$0xff]   ;;  %v2034_v20 = vld [vmem:[#allocation6 + $0x24] ss:$8 sps:$4 sm:$0xff]  }
  0x52   : > { %1019 = vmatpush1.bf16.msra.mxu1 %v2015_v7  ;;  %907 = vmatprep.subr.bf16.mxu0 %v2016_v8  ;;  %v2033_v19 = vld [vmem:[#allocation6 + $0x130] ss:$8 sps:$4 sm:$0xff]   ;;  %v2036_v21 = vld [vmem:[#allocation6 + $0x124] ss:$8 sps:$4 sm:$0xff]   ;;  %v2038_v22 = vld [vmem:[#allocation6 + $0x20] ss:$8 sps:$4 sm:$0xff]  }
  0x53   : > { %1020 = vmatprep.subr.bf16.mxu1 %v2018_v9  ;;  %v2039_v23 = vld [vmem:[#allocation6 + $0x120] ss:$8 sps:$4 sm:$0xff]   ;;  %v2040_v24 = vld [vmem:[#allocation6 + $0x14] ss:$8 sps:$4 sm:$0xff]   ;;  %v2044_v26 = vld [vmem:[#allocation6 + $0x10] ss:$8 sps:$4 sm:$0xff]  }
  0x54   : > { %v2042_v25 = vld [vmem:[#allocation6 + $0x114] ss:$8 sps:$4 sm:$0xff]   ;;  %v2045_v27 = vld [vmem:[#allocation6 + $0x110] ss:$8 sps:$4 sm:$0xff]   ;;  %v2046_v28 = vld [vmem:[#allocation6 + $0x4] ss:$8 sps:$4 sm:$0xff]  }
  0x55   : > { %908 = vmatpush1.bf16.msra.mxu0 %v2020_v10  ;;  %v2048_v29 = vld [vmem:[#allocation6 + $0x104] ss:$8 sps:$4 sm:$0xff]   ;;  %v2050_v30 = vld [vmem:[#allocation6] ss:$8 sps:$4 sm:$0xff]   ;;  %v2052_v32 = vld [vmem:[#allocation6 + $0xf4] ss:$8 sps:$4 sm:$0xff]  }
  0x56   : > { %1021 = vmatpush1.bf16.msra.mxu1 %v2021_v11  ;;  %909 = vmatprep.subr.bf16.mxu0 %v2022_v12  ;;  %v2051_v31 = vld [vmem:[#allocation6 + $0x100] ss:$8 sps:$4 sm:$0xff]   ;;  %v2054_v33 = vld [vmem:[#allocation6 + $0x1f4] ss:$8 sps:$4 sm:$0xff]   ;;  %v2056_v34 = vld [vmem:[#allocation6 + $0xf0] ss:$8 sps:$4 sm:$0xff]  }
  0x57   : > { %1022 = vmatprep.subr.bf16.mxu1 %v2024_v13  ;;  %v2057_v35 = vld [vmem:[#allocation6 + $0x1f0] ss:$8 sps:$4 sm:$0xff]   ;;  %v2058_v36 = vld [vmem:[#allocation6 + $0xe4] ss:$8 sps:$4 sm:$0xff]   ;;  %v2062_v38 = vld [vmem:[#allocation6 + $0xe0] ss:$8 sps:$4 sm:$0xff]  }
  0x58   : > { %v2060_v37 = vld [vmem:[#allocation6 + $0x1e4] ss:$8 sps:$4 sm:$0xff]   ;;  %v2063_v39 = vld [vmem:[#allocation6 + $0x1e0] ss:$8 sps:$4 sm:$0xff]   ;;  %v2064_v40 = vld [vmem:[#allocation6 + $0xd4] ss:$8 sps:$4 sm:$0xff]  }
  0x59   : > { %910 = vmatpush1.bf16.msra.mxu0 %v2026_v14  ;;  %v2066_v41 = vld [vmem:[#allocation6 + $0x1d4] ss:$8 sps:$4 sm:$0xff]   ;;  %v2068_v42 = vld [vmem:[#allocation6 + $0xd0] ss:$8 sps:$4 sm:$0xff]   ;;  %v2070_v44 = vld [vmem:[#allocation6 + $0xc4] ss:$8 sps:$4 sm:$0xff]  }
  0x5a   : > { %1023 = vmatpush1.bf16.msra.mxu1 %v2027_v15  ;;  %911 = vmatprep.subr.bf16.mxu0 %v2028_v16  ;;  %v2069_v43 = vld [vmem:[#allocation6 + $0x1d0] ss:$8 sps:$4 sm:$0xff]   ;;  %v2072_v45 = vld [vmem:[#allocation6 + $0x1c4] ss:$8 sps:$4 sm:$0xff]   ;;  %v2074_v46 = vld [vmem:[#allocation6 + $0xc0] ss:$8 sps:$4 sm:$0xff]  }
  0x5b   : > { %1024 = vmatprep.subr.bf16.mxu1 %v2030_v17  ;;  %v2075_v47 = vld [vmem:[#allocation6 + $0x1c0] ss:$8 sps:$4 sm:$0xff]   ;;  %v2076_v48 = vld [vmem:[#allocation6 + $0xb4] ss:$8 sps:$4 sm:$0xff]   ;;  %v2080_v52 = vld [vmem:[#allocation6 + $0xb0] ss:$8 sps:$4 sm:$0xff]  }
  0x5c   : > { %v2102_v49 = vld [vmem:[%s2458_s24 + $0x4] ss:$16 sps:$4 sm:$0xff]   ;;  %v2105_v51 = vld [vmem:[%s2458_s24 + $0xc] ss:$16 sps:$4 sm:$0xff]   ;;  %v2081_v53 = vld [vmem:[#allocation6 + $0x1b0] ss:$8 sps:$4 sm:$0xff]  }
  0x5d   : > { %912 = vmatpush1.bf16.msra.mxu0 %v2032_v18  ;;  %v2078_v50 = vld [vmem:[#allocation6 + $0x1b4] ss:$8 sps:$4 sm:$0xff]   ;;  %935 = vmatprep.mubr.bf16.mxu0 %v2102_v49  ;;  %v2082_v54 = vld [vmem:[#allocation6 + $0xa4] ss:$8 sps:$4 sm:$0xff]   ;;  %v2086_v56 = vld [vmem:[#allocation6 + $0xa0] ss:$8 sps:$4 sm:$0xff]  }
  0x5e   : > { %1025 = vmatpush1.bf16.msra.mxu1 %v2033_v19  ;;  %913 = vmatprep.subr.bf16.mxu0 %v2034_v20  ;;  %v2084_v55 = vld [vmem:[#allocation6 + $0x1a4] ss:$8 sps:$4 sm:$0xff]   ;;  %v2087_v57 = vld [vmem:[#allocation6 + $0x1a0] ss:$8 sps:$4 sm:$0xff]   ;;  %v2088_v58 = vld [vmem:[#allocation6 + $0x94] ss:$8 sps:$4 sm:$0xff]  }
  0x5f   : > { %1026 = vmatprep.subr.bf16.mxu1 %v2036_v21  ;;  %1048 = vmatprep.mubr.bf16.mxu1 %v2105_v51  ;;  %v2090_v59 = vld [vmem:[#allocation6 + $0x194] ss:$8 sps:$4 sm:$0xff]   ;;  %v2092_v60 = vld [vmem:[#allocation6 + $0x90] ss:$8 sps:$4 sm:$0xff]   ;;  %v2094_v62 = vld [vmem:[#allocation6 + $0x84] ss:$8 sps:$4 sm:$0xff]  }
  0x60   : > { %v2093_v61 = vld [vmem:[#allocation6 + $0x190] ss:$8 sps:$4 sm:$0xff]   ;;  %v2096_v63 = vld [vmem:[#allocation6 + $0x184] ss:$8 sps:$4 sm:$0xff]   ;;  %v2098_v0 = vld [vmem:[#allocation6 + $0x80] ss:$8 sps:$4 sm:$0xff]  }
  0x61   : > { %914 = vmatpush1.bf16.msra.mxu0 %v2038_v22  ;;  %v2099_v1 = vld [vmem:[#allocation6 + $0x180] ss:$8 sps:$4 sm:$0xff]   ;;  %v2106_v4 = vld [vmem:[%s2458_s24 + $0x24] ss:$16 sps:$4 sm:$0xff]   ;;  %v2108_v5 = vld [vmem:[%s2458_s24 + $0x2c] ss:$16 sps:$4 sm:$0xff]  }
  0x62   : > { %1027 = vmatpush1.bf16.msra.mxu1 %v2039_v23  ;;  %915 = vmatprep.subr.bf16.mxu0 %v2040_v24  ;;  %v2100_v2 = vld [vmem:[%s2458_s24] ss:$16 sps:$4 sm:$0xff]   ;;  %v2103_v3 = vld [vmem:[%s2458_s24 + $0x8] ss:$16 sps:$4 sm:$0xff]   ;;  %v2112_v12 = vld [vmem:[%s2458_s24 + $0x44] ss:$16 sps:$4 sm:$0xff]  }
  0x63   : > { %1028 = vmatprep.subr.bf16.mxu1 %v2042_v25  ;;  %v2148_v6 = vld [vmem:[%s2756_s3 + $0x78] sm:$0xff]   ;;  %v2150_v8 = vld [vmem:[%s2756_s3 + $0x70] sm:$0xff]   ;;  %v2152_v13 = vld [vmem:[%s2756_s3 + $0x68] sm:$0xff]   ;;  %vm1448_vm0 = vcmask 261120   ;;  %vm1542_vm1 = vcmask 130112   ;;  %vm1549_vm2 = vcmask 195712  }
  0x64   : > { %v2149_v7 = vld [vmem:[%s2756_s3 + $0x38] sm:$0xff]   ;;  %v2110_v9 = vld [vmem:[%s2458_s24 + $0x20] ss:$16 sps:$4 sm:$0xff]   ;;  %v2153_v15 = vld [vmem:[%s2756_s3 + $0x28] sm:$0xff]   ;;  %vm1556_vm3 = vcmask 261312   ;;  %vm1563_vm4 = vcmask 326912  }
  0x65   : > { %916 = vmatpush1.bf16.msra.mxu0 %v2044_v26  ;;  %v2111_v10 = vld [vmem:[%s2458_s24 + $0x28] ss:$16 sps:$4 sm:$0xff]   ;;  %v2151_v11 = vld [vmem:[%s2756_s3 + $0x30] sm:$0xff]   ;;  %v2114_v14 = vld [vmem:[%s2458_s24 + $0x4c] ss:$16 sps:$4 sm:$0xff]   ;;  %vm1570_vm5 = vcmask 392512  }
  0x66   : > { %1029 = vmatpush1.bf16.msra.mxu1 %v2045_v27  ;;  %917 = vmatprep.subr.bf16.mxu0 %v2046_v28  ;;  %v2154_v16 = vld [vmem:[%s2756_s3 + $0x60] sm:$0xff]   ;;  %v2156_v18 = vld [vmem:[%s2756_s3 + $0x58] sm:$0xff]   ;;  %vm1577_vm6 = vcmask 458112   ;;  %vm1584_vm7 = vcmask 523712   ;;  %vm1591_vm8 = vcmask 589312   ;;  %vm1598_vm9 = vcmask 654912  }
  0x67   : > { %1030 = vmatprep.subr.bf16.mxu1 %v2048_v29  ;;  %v2155_v17 = vld [vmem:[%s2756_s3 + $0x20] sm:$0xff]   ;;  %v2117_v20 = vld [vmem:[%s2458_s24 + $0x48] ss:$16 sps:$4 sm:$0xff]   ;;  %v2120_v22 = vld [vmem:[%s2458_s24 + $0x6c] ss:$16 sps:$4 sm:$0xff]   ;;  %vm1605_vm10 = vcmask 720512  }
  0x68   : > { %v2116_v19 = vld [vmem:[%s2458_s24 + $0x40] ss:$16 sps:$4 sm:$0xff]   ;;  %v2118_v21 = vld [vmem:[%s2458_s24 + $0x64] ss:$16 sps:$4 sm:$0xff]   ;;  %v2123_v24 = vld [vmem:[%s2458_s24 + $0x68] ss:$16 sps:$4 sm:$0xff]  }
  0x69   : > { %918 = vmatpush1.bf16.msra.mxu0 %v2050_v30  ;;  %v2122_v23 = vld [vmem:[%s2458_s24 + $0x60] ss:$16 sps:$4 sm:$0xff]   ;;  %v2124_v25 = vld [vmem:[%s2458_s24 + $0x84] ss:$16 sps:$4 sm:$0xff]   ;;  %v2126_v26 = vld [vmem:[%s2458_s24 + $0x8c] ss:$16 sps:$4 sm:$0xff]  }
  0x6a   : > { %1031 = vmatpush1.bf16.msra.mxu1 %v2051_v31  ;;  %919 = vmatprep.subr.bf16.mxu0 %v2052_v32  ;;  %v2128_v27 = vld [vmem:[%s2458_s24 + $0x80] ss:$16 sps:$4 sm:$0xff]   ;;  %v2129_v28 = vld [vmem:[%s2458_s24 + $0x88] ss:$16 sps:$4 sm:$0xff]   ;;  %v2130_v29 = vld [vmem:[%s2458_s24 + $0xa4] ss:$16 sps:$4 sm:$0xff]  }
  0x6b   : > { %1032 = vmatprep.subr.bf16.mxu1 %v2054_v33  ;;  %v2132_v30 = vld [vmem:[%s2458_s24 + $0xac] ss:$16 sps:$4 sm:$0xff]   ;;  %v2134_v31 = vld [vmem:[%s2458_s24 + $0xa0] ss:$16 sps:$4 sm:$0xff]   ;;  %v2135_v32 = vld [vmem:[%s2458_s24 + $0xa8] ss:$16 sps:$4 sm:$0xff]  }
  0x6c   : > { %v2136_v33 = vld [vmem:[%s2458_s24 + $0xc4] ss:$16 sps:$4 sm:$0xff]   ;;  %vm1612_vm11 = vcmask 786112   ;;  %vm1619_vm12 = vcmask 851712   ;;  %vm1626_vm13 = vcmask 917312   ;;  %vm1633_vm14 = vcmask 982912  }
  0x6d   : > { %920 = vmatpush2.bf16.msra.mxu0 %v2056_v34  ;;  %v2138_v34 = vld [vmem:[%s2458_s24 + $0xcc] ss:$16 sps:$4 sm:$0xff]   ;;  %s1858_s30 = sshll.u32 %s2359_s6, 4  ;;  %s312_s11 = scalar_lea.vmem [#allocation8], %s2454_s25  ;;  %vm1640_vm15 = vcmask 1048512  }
  0x6e   : > { %1033 = vmatpush2.bf16.msra.mxu1 %v2057_v35  ;;  %921 = vmatprep.subr.bf16.mxu0 %v2058_v36  ;;  %v2140_v35 = vld [vmem:[%s2458_s24 + $0xc0] ss:$16 sps:$4 sm:$0xff]   ;;  %v2141_v36 = vld [vmem:[%s2458_s24 + $0xc8] ss:$16 sps:$4 sm:$0xff]   ;;  %s1657_s8 = sshll.u32 %s312_s11, 4  ;;  %s2716_s15 = scalar_lea.hbm %s2760_s7, %s1858_s30  ;;  %s1658_s8 = int_to_ptr.vmem [resolvable:$true] %s1657_s8 }
  0x6f   : > { %1034 = vmatprep.subr.bf16.mxu1 %v2060_v37  ;;  %v2142_v37 = vld [vmem:[%s2458_s24 + $0xe4] ss:$16 sps:$4 sm:$0xff]   ;;  %s1645_s16 = scalar_lea.sflag [#allocation5], %s2454_s25  ;;  %s2218_s18 = scalar_lea.vmem %s1658_s8, 16 }
  0x70   : > { %p2219_p3 = scmp.ne.s32.totalorder %s1658_s8, %s2218_s18  ;;  %p2776_p11 = scmp.ne.s32.totalorder %s2770_s23, 0 }
  0x71   : > { %922 = vmatpush2.bf16.msra.mxu0 %v2062_v38  ;;  %v2144_v38 = vld [vmem:[%s2458_s24 + $0xec] ss:$16 sps:$4 sm:$0xff]   ;;  %s2294_s6 = smov [#allocation8]  }
  0x72   : > { %1035 = vmatpush2.bf16.msra.mxu1 %v2063_v39  ;;  %923 = vmatprep.subr.bf16.mxu0 %v2064_v40  ;;  %v2146_v39 = vld [vmem:[%s2458_s24 + $0xe0] ss:$16 sps:$4 sm:$0xff]   ;;  %v2147_v40 = vld [vmem:[%s2458_s24 + $0xe8] ss:$16 sps:$4 sm:$0xff]   ;;  %s1497_s24 = sld [smem:[#allocation2]]  ;;  %p2220_p7 = pnand %p2219_p3, %p2776_p11 }
  0x73   : > { %1036 = vmatprep.subr.bf16.mxu1 %v2066_v41  ;;  %v2157_v41 = vld [vmem:[%s2756_s3 + $0x18] sm:$0xff]   ;;  %s2222_s13 = sshll.u32 %s2294_s6, 4  ;;  %s2223_s13 = int_to_ptr.vmem [resolvable:$false] %s2222_s13 }
  0x74   : > { %p2221_p12 = pneg %p2220_p7  ;;  %s2224_s12 = scalar_lea.vmem %s2223_s13, 32 }
  0x75   : > { %924 = vmatpush2.bf16.msra.mxu0 %v2068_v42  ;;  %v2158_v42 = vld [vmem:[%s2756_s3 + $0x50] sm:$0xff]   ;;  %p2225_p10 = scmp.lt.s32.totalorder %s1658_s8, %s2223_s13  ;;  %p2226_p2 = scmp.lt.s32.totalorder %s2224_s12, %s2218_s18 }
  0x76   : > { %1037 = vmatpush2.bf16.msra.mxu1 %v2069_v43  ;;  %925 = vmatprep.subr.bf16.mxu0 %v2070_v44  ;;  %v2159_v43 = vld [vmem:[%s2756_s3 + $0x10] sm:$0xff]   ;;  %v2160_v44 = vld [vmem:[%s2756_s3 + $0x48] sm:$0xff]  }
  0x77   : > { %1038 = vmatprep.subr.bf16.mxu1 %v2072_v45  ;;  %v2161_v45 = vld [vmem:[%s2756_s3 + $0x8] sm:$0xff]   ;;  %p2227_p13 = por %p2226_p2, %p2225_p10 }
  0x79   : > { %926 = vmatpush2.bf16.msra.mxu0 %v2074_v46  ;;  %v2162_v46 = vld [vmem:[%s2756_s3 + $0x40] sm:$0xff]   ;;  %p2228_p0 = pnand %p2227_p13, %p2221_p12 }
  0x7a   : > { %1039 = vmatpush2.bf16.msra.mxu1 %v2075_v47  ;;  %927 = vmatprep.subr.bf16.mxu0 %v2076_v48  ;;  %v2163_v47 = vld [vmem:[%s2756_s3] sm:$0xff]   ;;  %v413_v48 = vlaneseq }
  0x7b   : > { %1040 = vmatprep.subr.bf16.mxu1 %v2078_v50 }
  0x7c   : > { %v2549_v49 = vshrl.u32 %v413_v48, 7 }
  0x7d   : > { %928 = vmatpush2.bf16.msra.mxu0 %v2080_v52  ;;  %v411_v52 = vld [vmem:[%s2755_s2] sm:$0x3] }
  0x7e   : > { %1041 = vmatpush2.bf16.msra.mxu1 %v2081_v53  ;;  %929 = vmatprep.subr.bf16.mxu0 %v2082_v54  ;;  %v419_v50 = vsub.s32 1, %v2549_v49  ;;  %v415_v51 = vsub.s32 0, %v2549_v49 }
  0x7f   : > { %1042 = vmatprep.subr.bf16.mxu1 %v2084_v55 }
  0x80   : > { %v2556_v53 = vrot.slane %v411_v52, %v419_v50  ;;  %v2558_v54 = vrot.slane %v411_v52, %v415_v51 }
  0x81   : > { %930 = vmatpush2.bf16.msra.mxu0 %v2086_v56 }
  0x82   : > { %1043 = vmatpush2.bf16.msra.mxu1 %v2087_v57  ;;  %931 = vmatprep.subr.bf16.mxu0 %v2088_v58 }
  0x83   : > { %1044 = vmatprep.subr.bf16.mxu1 %v2090_v59 }
  0x85   : > { %932 = vmatpush2.bf16.msra.mxu0 %v2092_v60 }
  0x86   : > { %1045 = vmatpush2.bf16.msra.mxu1 %v2093_v61  ;;  %933 = vmatprep.subr.bf16.mxu0 %v2094_v62 }
  0x87   : > { %1046 = vmatprep.subr.bf16.mxu1 %v2096_v63 }
  0x89   : > { %934 = vmatpush2.bf16.msra.mxu0 %v2098_v0 }
  0x8a   : > { %1047 = vmatpush2.bf16.msra.mxu1 %v2099_v1  ;;  %1863 = vmatprep.subr.bf16.mxu0 %v2148_v6 }
  0x8b   : > { %1927 = vmatprep.subr.bf16.mxu1 %v2148_v6 }
  0x8c   : > { %936 = vmatmul.mubr.bf16.vlgmr.msra.gmra.mxu0 %v2100_v2 }
  0x8d   : > { %1049 = vmatmul.mubr.bf16.vlgmr.msra.gmra.mxu1 %v2103_v3  ;;  %945 = vmatprep.mubr.bf16.mxu0 %v2106_v4 }
  0x8e   : > { %1058 = vmatprep.mubr.bf16.mxu1 %v2108_v5  ;;  %1864 = vmatpush3.bf16.msra.mxu0 %v2149_v7 }
  0x8f   : > { %1935 = vmatpush3.bf16.msra.mxu1 %v2149_v7  ;;  %1865 = vmatprep.subr.bf16.mxu0 %v2150_v8 }
  0x90   : > { %1928 = vmatprep.subr.bf16.mxu1 %v2150_v8 }
  0x92   : > { %1866 = vmatpush3.bf16.msra.mxu0 %v2151_v11 }
  0x93   : > { %1936 = vmatpush3.bf16.msra.mxu1 %v2151_v11  ;;  %1867 = vmatprep.subr.bf16.mxu0 %v2152_v13 }
  0x94   : > { %1929 = vmatprep.subr.bf16.mxu1 %v2152_v13  ;;  %946 = vmatmul.mubr.bf16.gmra.mxu0 %v2110_v9 }
  0x95   : > { %1059 = vmatmul.mubr.bf16.gmra.mxu1 %v2111_v10  ;;  %955 = vmatprep.mubr.bf16.mxu0 %v2112_v12 }
  0x96   : > { %1068 = vmatprep.mubr.bf16.mxu1 %v2114_v14  ;;  %1868 = vmatpush3.bf16.msra.mxu0 %v2153_v15 }
  0x97   : > { %1937 = vmatpush3.bf16.msra.mxu1 %v2153_v15  ;;  %1869 = vmatprep.subr.bf16.mxu0 %v2154_v16 }
  0x98   : > { %1930 = vmatprep.subr.bf16.mxu1 %v2154_v16 }
  0x9a   : > { %1870 = vmatpush3.bf16.msra.mxu0 %v2155_v17 }
  0x9b   : > { %1938 = vmatpush3.bf16.msra.mxu1 %v2155_v17  ;;  %1871 = vmatprep.subr.bf16.mxu0 %v2156_v18 }
  0x9c   : > { %1931 = vmatprep.subr.bf16.mxu1 %v2156_v18  ;;  %956 = vmatmul.mubr.bf16.gmra.mxu0 %v2116_v19 }
  0x9d   : > { %1069 = vmatmul.mubr.bf16.gmra.mxu1 %v2117_v20  ;;  %965 = vmatprep.mubr.bf16.mxu0 %v2118_v21 }
  0x9e   : > { %1078 = vmatprep.mubr.bf16.mxu1 %v2120_v22  ;;  %1872 = vmatpush3.bf16.msra.mxu0 %v2157_v41 }
  0x9f   : > { %1939 = vmatpush3.bf16.msra.mxu1 %v2157_v41  ;;  %1873 = vmatprep.subr.bf16.mxu0 %v2158_v42 }
  0xa0   : > { %1932 = vmatprep.subr.bf16.mxu1 %v2158_v42 }
  0xa2   : > { %1874 = vmatpush3.bf16.msra.mxu0 %v2159_v43 }
  0xa3   : > { %1940 = vmatpush3.bf16.msra.mxu1 %v2159_v43  ;;  %1875 = vmatprep.subr.bf16.mxu0 %v2160_v44 }
  0xa4   : > { %966 = vmatmul.mubr.bf16.gmra.mxu0 %v2122_v23  ;;  %1933 = vmatprep.subr.bf16.mxu1 %v2160_v44 }
  0xa5   : > { %1079 = vmatmul.mubr.bf16.gmra.mxu1 %v2123_v24  ;;  %975 = vmatprep.mubr.bf16.mxu0 %v2124_v25 }
  0xa6   : > { %1088 = vmatprep.mubr.bf16.mxu1 %v2126_v26  ;;  %1876 = vmatpush3.bf16.msra.mxu0 %v2161_v45 }
  0xa7   : > { %1941 = vmatpush3.bf16.msra.mxu1 %v2161_v45  ;;  %1877 = vmatprep.subr.bf16.mxu0 %v2162_v46 }
  0xa8   : > { %1934 = vmatprep.subr.bf16.mxu1 %v2162_v46 }
  0xaa   : > { %1878 = vmatpush3.bf16.msra.mxu0 %v2163_v47 }
  0xab   : > { %1942 = vmatpush3.bf16.msra.mxu1 %v2163_v47 }
  0xac   : > { %976 = vmatmul.mubr.bf16.gmra.mxu0 %v2128_v27 }
  0xad   : > { %1089 = vmatmul.mubr.bf16.gmra.mxu1 %v2129_v28  ;;  %985 = vmatprep.mubr.bf16.mxu0 %v2130_v29 }
  0xae   : > { %1098 = vmatprep.mubr.bf16.mxu1 %v2132_v30 }
  0xb4   : > { %986 = vmatmul.mubr.bf16.gmra.mxu0 %v2134_v31 }
  0xb5   : > { %1099 = vmatmul.mubr.bf16.gmra.mxu1 %v2135_v32  ;;  %995 = vmatprep.mubr.bf16.mxu0 %v2136_v33 }
  0xb6   : > { %1108 = vmatprep.mubr.bf16.mxu1 %v2138_v34 }
  0xbc   : > { %996 = vmatmul.mubr.bf16.gmra.mxu0 %v2140_v35 }
  0xbd   : > { %1109 = vmatmul.mubr.bf16.gmra.mxu1 %v2141_v36  ;;  %1005 = vmatprep.mubr.bf16.mxu0 %v2142_v37 }
  0xbe   : > { %1118 = vmatprep.mubr.bf16.mxu1 %v2144_v38 }
  0xc4   : > { %1006 = vmatmul.mubr.bf16.gmra.mxu0 %v2146_v39 }
  0xc5   : > { %1119 = vmatmul.mubr.bf16.gmra.mxu1 %v2147_v40 }
 0x14c   : > { %v937_v55 = vpop.f32.mrf.mxu0 }
 0x14d   : > { %v1050_v56 = vpop.f32.mrf.mxu1  ;;  %v938_v60 = vadd.f32 %v937_v55, %v2558_v54 }
 0x14e   : > { %v939_v57 = vpop.f32.mrf.mxu0 }
 0x14f   : > { %v1052_v58 = vpop.f32.mrf.mxu1  ;;  %v940_v59 = vadd.f32 %v939_v57, %v2556_v53  ;;  %v1051_v5 = vadd.f32 %v1050_v56, %v938_v60 }
 0x150   : > { %v941_v61 = vpop.f32.mrf.mxu0 }
 0x151   : > { %v1054_v62 = vpop.f32.mrf.mxu1  ;;  %v942_v63 = vadd.f32 %v941_v61, %v2558_v54  ;;  %v1053_v2 = vadd.f32 %v1052_v58, %v940_v59  ;;  %v1129_v15 = vmax.f32 %v1051_v5, 0.0 }
 0x152   : > { %v943_v0 = vpop.f32.mrf.mxu0 }
 0x153   : > { %v1056_v1 = vpop.f32.mrf.mxu1  ;;  %v1055_v3 = vadd.f32 %v1054_v62, %v942_v63  ;;  %v944_v4 = vadd.f32 %v943_v0, %v2556_v53  ;;  %v1130_v12 = vmax.f32 %v1053_v2, 0.0 }
 0x154   : > { %v947_v6 = vpop.f32.mrf.mxu0 }
 0x155   : > { %v1060_v7 = vpop.f32.mrf.mxu1  ;;  %v1057_v8 = vadd.f32 %v1056_v1, %v944_v4  ;;  %v1131_v9 = vmax.f32 %v1055_v3, 0.0  ;;  %v948_v16 = vadd.f32 %v947_v6, %v2558_v54 }
 0x156   : > { %v949_v10 = vpop.f32.mrf.mxu0 }
 0x157   : > { %v1062_v11 = vpop.f32.mrf.mxu1  ;;  %v1132_v13 = vmax.f32 %v1057_v8, 0.0  ;;  %v950_v14 = vadd.f32 %v949_v10, %v2556_v53  ;;  %v1161_v21 = vpack.c.bf16 %v1131_v9, %v1129_v15  ;;  %v1061_v27 = vadd.f32 %v1060_v7, %v948_v16 }
 0x158   : > { %v951_v17 = vpop.f32.mrf.mxu0 }
 0x159   : > { %v1064_v18 = vpop.f32.mrf.mxu1  ;;  %v1162_v19 = vpack.c.bf16 %v1132_v13, %v1130_v12  ;;  %v952_v20 = vadd.f32 %v951_v17, %v2558_v54  ;;  %v1063_v24 = vadd.f32 %v1062_v11, %v950_v14  ;;  %v1133_v37 = vmax.f32 %v1061_v27, 0.0 }
 0x15a   : > { %v953_v22 = vpop.f32.mrf.mxu0 }
 0x15b   : > { %v1066_v23 = vpop.f32.mrf.mxu1  ;;  %v1065_v25 = vadd.f32 %v1064_v18, %v952_v20  ;;  %v954_v26 = vadd.f32 %v953_v22, %v2556_v53  ;;  %1344 = vmatprep.mubr.bf16.mxu0 %v1162_v19  ;;  %v1134_v34 = vmax.f32 %v1063_v24, 0.0 }
 0x15c   : > { %v957_v28 = vpop.f32.mrf.mxu0  ;;  %1345 = vmatmul.mubr.bf16.vlgmr.msra.gmra.mxu0 %v1161_v21 }
 0x15d   : > { %v1070_v29 = vpop.f32.mrf.mxu1  ;;  %v1067_v30 = vadd.f32 %v1066_v23, %v954_v26  ;;  %v1135_v31 = vmax.f32 %v1065_v25, 0.0  ;;  %v958_v38 = vadd.f32 %v957_v28, %v2558_v54 }
 0x15e   : > { %v959_v32 = vpop.f32.mrf.mxu0 }
 0x15f   : > { %v1072_v33 = vpop.f32.mrf.mxu1  ;;  %v1136_v35 = vmax.f32 %v1067_v30, 0.0  ;;  %v960_v36 = vadd.f32 %v959_v32, %v2556_v53  ;;  %v1163_v43 = vpack.c.bf16 %v1135_v31, %v1133_v37  ;;  %v1071_v51 = vadd.f32 %v1070_v29, %v958_v38 }
 0x160   : > { %v961_v39 = vpop.f32.mrf.mxu0 }
 0x161   : > { %v1074_v40 = vpop.f32.mrf.mxu1  ;;  %v1164_v41 = vpack.c.bf16 %v1136_v35, %v1134_v34  ;;  %v962_v42 = vadd.f32 %v961_v39, %v2558_v54  ;;  %v1073_v46 = vadd.f32 %v1072_v33, %v960_v36  ;;  %v1137_v63 = vmax.f32 %v1071_v51, 0.0 }
 0x162   : > { %v963_v44 = vpop.f32.mrf.mxu0 }
 0x163   : > { %v1076_v45 = vpop.f32.mrf.mxu1  ;;  %v1075_v47 = vadd.f32 %v1074_v40, %v962_v42  ;;  %v964_v50 = vadd.f32 %v963_v44, %v2556_v53  ;;  %1352 = vmatprep.mubr.bf16.mxu0 %v1164_v41  ;;  %v1138_v60 = vmax.f32 %v1073_v46, 0.0 }
 0x164   : > { %v967_v52 = vpop.f32.mrf.mxu0  ;;  %1353 = vmatmul.mubr.bf16.gmra.mxu0 %v1163_v43 }
 0x165   : > { %v1080_v55 = vpop.f32.mrf.mxu1  ;;  %v1077_v56 = vadd.f32 %v1076_v45, %v964_v50  ;;  %v1139_v57 = vmax.f32 %v1075_v47, 0.0  ;;  %v968_v0 = vadd.f32 %v967_v52, %v2558_v54 }
 0x166   : > { %v969_v58 = vpop.f32.mrf.mxu0 }
 0x167   : > { %v1082_v59 = vpop.f32.mrf.mxu1  ;;  %v1140_v61 = vmax.f32 %v1077_v56, 0.0  ;;  %v970_v62 = vadd.f32 %v969_v58, %v2556_v53  ;;  %v1165_v5 = vpack.c.bf16 %v1139_v57, %v1137_v63  ;;  %v1081_v11 = vadd.f32 %v1080_v55, %v968_v0 }
 0x168   : > { %v971_v1 = vpop.f32.mrf.mxu0 }
 0x169   : > { %v1084_v2 = vpop.f32.mrf.mxu1  ;;  %v1166_v3 = vpack.c.bf16 %v1140_v61, %v1138_v60  ;;  %v972_v4 = vadd.f32 %v971_v1, %v2558_v54  ;;  %v1083_v8 = vadd.f32 %v1082_v59, %v970_v62  ;;  %v1141_v21 = vmax.f32 %v1081_v11, 0.0 }
 0x16a   : > { %v973_v6 = vpop.f32.mrf.mxu0 }
 0x16b   : > { %v1086_v7 = vpop.f32.mrf.mxu1  ;;  %v1085_v9 = vadd.f32 %v1084_v2, %v972_v4  ;;  %v974_v10 = vadd.f32 %v973_v6, %v2556_v53  ;;  %1360 = vmatprep.mubr.bf16.mxu0 %v1166_v3  ;;  %v1142_v18 = vmax.f32 %v1083_v8, 0.0 }
 0x16c   : > { %v977_v12 = vpop.f32.mrf.mxu0  ;;  %1361 = vmatmul.mubr.bf16.gmra.mxu0 %v1165_v5 }
 0x16d   : > { %v1090_v13 = vpop.f32.mrf.mxu1  ;;  %v1087_v14 = vadd.f32 %v1086_v7, %v974_v10  ;;  %v1143_v15 = vmax.f32 %v1085_v9, 0.0  ;;  %v978_v22 = vadd.f32 %v977_v12, %v2558_v54 }
 0x16e   : > { %v979_v16 = vpop.f32.mrf.mxu0 }
 0x16f   : > { %v1092_v17 = vpop.f32.mrf.mxu1  ;;  %v1144_v19 = vmax.f32 %v1087_v14, 0.0  ;;  %v980_v20 = vadd.f32 %v979_v16, %v2556_v53  ;;  %v1167_v27 = vpack.c.bf16 %v1143_v15, %v1141_v21  ;;  %v1091_v33 = vadd.f32 %v1090_v13, %v978_v22 }
 0x170   : > { %v981_v23 = vpop.f32.mrf.mxu0 }
 0x171   : > { %v1094_v24 = vpop.f32.mrf.mxu1  ;;  %v1168_v25 = vpack.c.bf16 %v1144_v19, %v1142_v18  ;;  %v982_v26 = vadd.f32 %v981_v23, %v2558_v54  ;;  %v1093_v30 = vadd.f32 %v1092_v17, %v980_v20  ;;  %v1145_v43 = vmax.f32 %v1091_v33, 0.0 }
 0x172   : > { %v983_v28 = vpop.f32.mrf.mxu0 }
 0x173   : > { %v1096_v29 = vpop.f32.mrf.mxu1  ;;  %v1095_v31 = vadd.f32 %v1094_v24, %v982_v26  ;;  %v984_v32 = vadd.f32 %v983_v28, %v2556_v53  ;;  %1368 = vmatprep.mubr.bf16.mxu0 %v1168_v25  ;;  %v1146_v40 = vmax.f32 %v1093_v30, 0.0 }
 0x174   : > { %v987_v34 = vpop.f32.mrf.mxu0  ;;  %1369 = vmatmul.mubr.bf16.gmra.mxu0 %v1167_v27 }
 0x175   : > { %v1100_v35 = vpop.f32.mrf.mxu1  ;;  %v1097_v36 = vadd.f32 %v1096_v29, %v984_v32  ;;  %v1147_v37 = vmax.f32 %v1095_v31, 0.0  ;;  %v988_v44 = vadd.f32 %v987_v34, %v2558_v54 }
 0x176   : > { %v989_v38 = vpop.f32.mrf.mxu0 }
 0x177   : > { %v1102_v39 = vpop.f32.mrf.mxu1  ;;  %v1148_v41 = vmax.f32 %v1097_v36, 0.0  ;;  %v990_v42 = vadd.f32 %v989_v38, %v2556_v53  ;;  %v1169_v51 = vpack.c.bf16 %v1147_v37, %v1145_v43  ;;  %v1101_v59 = vadd.f32 %v1100_v35, %v988_v44 }
 0x178   : > { %v991_v45 = vpop.f32.mrf.mxu0 }
 0x179   : > { %v1104_v46 = vpop.f32.mrf.mxu1  ;;  %v1170_v47 = vpack.c.bf16 %v1148_v41, %v1146_v40  ;;  %v992_v50 = vadd.f32 %v991_v45, %v2558_v54  ;;  %v1103_v56 = vadd.f32 %v1102_v39, %v990_v42  ;;  %v1149_v5 = vmax.f32 %v1101_v59, 0.0 }
 0x17a   : > { %v993_v52 = vpop.f32.mrf.mxu0 }
 0x17b   : > { %v1106_v55 = vpop.f32.mrf.mxu1  ;;  %v1105_v57 = vadd.f32 %v1104_v46, %v992_v50  ;;  %v994_v58 = vadd.f32 %v993_v52, %v2556_v53  ;;  %1376 = vmatprep.mubr.bf16.mxu1 %v1170_v47  ;;  %v1150_v2 = vmax.f32 %v1103_v56, 0.0  ;;  %v2595_v47 = vld [vmem:[%s2757_s4] ss:$0 sm:$0xff] }
 0x17c   : > { %v997_v60 = vpop.f32.mrf.mxu0  ;;  %1377 = vmatmul.mubr.bf16.vlgmr.msra.gmra.mxu1 %v1169_v51  ;;  %v2601_v56 = vld [vmem:[%s2758_s5] ss:$0 sm:$0xff] }
 0x17d   : > { %v1110_v61 = vpop.f32.mrf.mxu1  ;;  %v1107_v62 = vadd.f32 %v1106_v55, %v994_v58  ;;  %v1151_v63 = vmax.f32 %v1105_v57, 0.0  ;;  %v998_v6 = vadd.f32 %v997_v60, %v2558_v54 }
 0x17e   : > { %v999_v0 = vpop.f32.mrf.mxu0 }
 0x17f   : > { %v1112_v1 = vpop.f32.mrf.mxu1  ;;  %v1152_v3 = vmax.f32 %v1107_v62, 0.0  ;;  %v1000_v4 = vadd.f32 %v999_v0, %v2556_v53  ;;  %v1171_v11 = vpack.c.bf16 %v1151_v63, %v1149_v5  ;;  %v1111_v17 = vadd.f32 %v1110_v61, %v998_v6 }
 0x180   : > { %v1001_v7 = vpop.f32.mrf.mxu0 }
 0x181   : > { %v1114_v8 = vpop.f32.mrf.mxu1  ;;  %v1172_v9 = vpack.c.bf16 %v1152_v3, %v1150_v2  ;;  %v1002_v10 = vadd.f32 %v1001_v7, %v2558_v54  ;;  %v1113_v14 = vadd.f32 %v1112_v1, %v1000_v4  ;;  %v1153_v27 = vmax.f32 %v1111_v17, 0.0 }
 0x182   : > { %v1003_v12 = vpop.f32.mrf.mxu0 }
 0x183   : > { %v1116_v13 = vpop.f32.mrf.mxu1  ;;  %v1115_v15 = vadd.f32 %v1114_v8, %v1002_v10  ;;  %v1004_v16 = vadd.f32 %v1003_v12, %v2556_v53  ;;  %1384 = vmatprep.mubr.bf16.mxu1 %v1172_v9  ;;  %v1154_v24 = vmax.f32 %v1113_v14, 0.0 }
 0x184   : > { %v1007_v18 = vpop.f32.mrf.mxu0  ;;  %1385 = vmatmul.mubr.bf16.gmra.mxu1 %v1171_v11 }
 0x185   : > { %v1120_v19 = vpop.f32.mrf.mxu1  ;;  %v1117_v20 = vadd.f32 %v1116_v13, %v1004_v16  ;;  %v1155_v21 = vmax.f32 %v1115_v15, 0.0  ;;  %v1008_v28 = vadd.f32 %v1007_v18, %v2558_v54 }
 0x186   : > { %v1009_v22 = vpop.f32.mrf.mxu0 }
 0x187   : > { %v1122_v23 = vpop.f32.mrf.mxu1  ;;  %v1156_v25 = vmax.f32 %v1117_v20, 0.0  ;;  %v1010_v26 = vadd.f32 %v1009_v22, %v2556_v53  ;;  %v1173_v33 = vpack.c.bf16 %v1155_v21, %v1153_v27  ;;  %v1121_v38 = vadd.f32 %v1120_v19, %v1008_v28 }
 0x188   : > { %v1011_v29 = vpop.f32.mrf.mxu0 }
 0x189   : > { %v1124_v30 = vpop.f32.mrf.mxu1  ;;  %v1174_v31 = vpack.c.bf16 %v1156_v25, %v1154_v24  ;;  %v1012_v32 = vadd.f32 %v1011_v29, %v2558_v54  ;;  %v1123_v35 = vadd.f32 %v1122_v23, %v1010_v26  ;;  %v1157_v44 = vmax.f32 %v1121_v38, 0.0 }
 0x18a   : > { %v1013_v34 = vpop.f32.mrf.mxu0 }
 0x18b   : > { %v1125_v36 = vadd.f32 %v1124_v30, %v1012_v32  ;;  %v1014_v37 = vadd.f32 %v1013_v34, %v2556_v53  ;;  %1392 = vmatprep.mubr.bf16.mxu1 %v1174_v31  ;;  %v1126_v39 = vpop.f32.mrf.mxu1  ;;  %v1158_v42 = vmax.f32 %v1123_v35, 0.0 }
 0x18c   : > { %1393 = vmatmul.mubr.bf16.gmra.mxu1 %v1173_v33 }
 0x18d   : > { %v1127_v40 = vadd.f32 %v1126_v39, %v1014_v37  ;;  %v1159_v41 = vmax.f32 %v1125_v36, 0.0 }
 0x18f   : > { %v1160_v43 = vmax.f32 %v1127_v40, 0.0  ;;  %v1175_v46 = vpack.c.bf16 %v1159_v41, %v1157_v44 }
 0x191   : > { %v1176_v45 = vpack.c.bf16 %v1160_v43, %v1158_v42 }
 0x193   : > { %1400 = vmatprep.mubr.bf16.mxu1 %v1176_v45 }
 0x194   : > { %1401 = vmatmul.mubr.bf16.gmra.mxu1 %v1175_v46 }
 0x21c   : > { %v1879_v54 = vpop.f32.mrf.mxu0 }
 0x21e   : > { %v1880_v53 = vpop.f32.mrf.mxu0 }
 0x21f   : > { %v1881_v50 = vadd.f32 %v1880_v53, %v1879_v54 }
 0x220   : > { %v1882_v51 = vpop.f32.mrf.mxu0 }
 0x221   : > { %v1347_v52 = vadd.f32 %v1881_v50, %v2595_v47 }
 0x222   : > { %v1883_v55 = vpop.f32.mrf.mxu0 }
 0x223   : > { %v1409_v57 = vmax.f32 %v1347_v52, 0.0  ;;  %v1884_v58 = vadd.f32 %v1883_v55, %v1882_v51 }
 0x224   : > { %v1885_v59 = vpop.f32.mrf.mxu0 }
 0x225   : > { %v1350_v60 = vadd.f32 %v1884_v58, %v2595_v47  ;;  %v1432_v61 = vmul.f32 %v2601_v56, %v1409_v57 }
 0x226   : > { %v1886_v62 = vpop.f32.mrf.mxu0 }
 0x227   : > { %v1410_v63 = vmax.f32 %v1350_v60, 0.0  ;;  %v1887_v0 = vadd.f32 %v1886_v62, %v1885_v59  ;;  %v1449_v1 = vsel %vm1448_vm0, %v1432_v61, 0.0 }
 0x228   : > { %v1888_v2 = vpop.f32.mrf.mxu0  ;;  %1450 = vadd.xlane.f32.xlu0 %v1449_v1 }
 0x229   : > { %v1355_v3 = vadd.f32 %v1887_v0, %v2595_v47  ;;  %v1433_v4 = vmul.f32 %v2601_v56, %v1410_v63 }
 0x22a   : > { %v1889_v5 = vpop.f32.mrf.mxu0 }
 0x22b   : > { %v1411_v6 = vmax.f32 %v1355_v3, 0.0  ;;  %v1890_v7 = vadd.f32 %v1889_v5, %v1888_v2  ;;  %v1452_v8 = vsel %vm1448_vm0, %v1433_v4, 0.0 }
 0x22c   : > { %v1891_v9 = vpop.f32.mrf.mxu0  ;;  %1453 = vadd.xlane.f32.xlu0 %v1452_v8 }
 0x22d   : > { %v1358_v10 = vadd.f32 %v1890_v7, %v2595_v47  ;;  %v1434_v11 = vmul.f32 %v2601_v56, %v1411_v6 }
 0x22e   : > { %v1892_v12 = vpop.f32.mrf.mxu0 }
 0x22f   : > { %v1412_v13 = vmax.f32 %v1358_v10, 0.0  ;;  %v1893_v14 = vadd.f32 %v1892_v12, %v1891_v9  ;;  %v1455_v15 = vsel %vm1448_vm0, %v1434_v11, 0.0 }
 0x230   : > { %v1894_v16 = vpop.f32.mrf.mxu0  ;;  %1456 = vadd.xlane.f32.xlu1 %v1455_v15 }
 0x231   : > { %v1363_v17 = vadd.f32 %v1893_v14, %v2595_v47  ;;  %v1435_v18 = vmul.f32 %v2601_v56, %v1412_v13 }
 0x232   : > { %v1895_v19 = vpop.f32.mrf.mxu0 }
 0x233   : > { %v1413_v20 = vmax.f32 %v1363_v17, 0.0  ;;  %v1896_v21 = vadd.f32 %v1895_v19, %v1894_v16  ;;  %v1458_v22 = vsel %vm1448_vm0, %v1435_v18, 0.0 }
 0x234   : > { %v1897_v23 = vpop.f32.mrf.mxu0  ;;  %1459 = vadd.xlane.f32.xlu1 %v1458_v22 }
 0x235   : > { %v1366_v24 = vadd.f32 %v1896_v21, %v2595_v47  ;;  %v1436_v25 = vmul.f32 %v2601_v56, %v1413_v20 }
 0x236   : > { %v1898_v26 = vpop.f32.mrf.mxu0 }
 0x237   : > { %v1414_v27 = vmax.f32 %v1366_v24, 0.0  ;;  %v1899_v28 = vadd.f32 %v1898_v26, %v1897_v23  ;;  %v1461_v29 = vsel %vm1448_vm0, %v1436_v25, 0.0 }
 0x238   : > { %v1900_v30 = vpop.f32.mrf.mxu0  ;;  %1462 = vadd.xlane.f32.xlu0 %v1461_v29 }
 0x239   : > { %v1371_v31 = vadd.f32 %v1899_v28, %v2595_v47  ;;  %v1437_v32 = vmul.f32 %v2601_v56, %v1414_v27 }
 0x23a   : > { %v1901_v33 = vpop.f32.mrf.mxu0 }
 0x23b   : > { %v1415_v34 = vmax.f32 %v1371_v31, 0.0  ;;  %v1902_v35 = vadd.f32 %v1901_v33, %v1900_v30  ;;  %v1464_v36 = vsel %vm1448_vm0, %v1437_v32, 0.0 }
 0x23c   : > { %v1903_v37 = vpop.f32.mrf.mxu1  ;;  %1465 = vadd.xlane.f32.xlu1 %v1464_v36 }
 0x23d   : > { %v1374_v38 = vadd.f32 %v1902_v35, %v2595_v47  ;;  %v1438_v39 = vmul.f32 %v2601_v56, %v1415_v34 }
 0x23e   : > { %v1904_v40 = vpop.f32.mrf.mxu1 }
 0x23f   : > { %v1416_v41 = vmax.f32 %v1374_v38, 0.0  ;;  %v1905_v42 = vadd.f32 %v1904_v40, %v1903_v37  ;;  %v1467_v43 = vsel %vm1448_vm0, %v1438_v39, 0.0 }
 0x240   : > { %v1906_v44 = vpop.f32.mrf.mxu1  ;;  %1468 = vadd.xlane.f32.xlu0 %v1467_v43  ;;  %v2651_v43 = vand.u32 127, %v413_v48 }
 0x241   : > { %v1379_v45 = vadd.f32 %v1905_v42, %v2595_v47  ;;  %v1439_v46 = vmul.f32 %v2601_v56, %v1416_v41 }
 0x242   : > { %v1907_v54 = vpop.f32.mrf.mxu1 }
 0x243   : > { %v1417_v53 = vmax.f32 %v1379_v45, 0.0  ;;  %v1908_v50 = vadd.f32 %v1907_v54, %v1906_v44  ;;  %v1470_v51 = vsel %vm1448_vm0, %v1439_v46, 0.0  ;;  %v1537_v45 = vadd.s32 4294967288, %v2651_v43 }
 0x244   : > { %v1909_v52 = vpop.f32.mrf.mxu1  ;;  %1471 = vadd.xlane.f32.xlu1 %v1470_v51  ;;  %v1544_v46 = vadd.s32 4294967280, %v2651_v43  ;;  %v1551_v54 = vadd.s32 4294967272, %v2651_v43  ;;  %v1535_v51 = vsub.s32 %v2651_v43, %v2549_v49 }
 0x245   : > { %v1382_v55 = vadd.f32 %v1908_v50, %v2595_v47  ;;  %v1440_v57 = vmul.f32 %v2601_v56, %v1417_v53  ;;  %v2657_v50 = vstv %s1497_s24 }
 0x246   : > { %v1910_v58 = vpop.f32.mrf.mxu1 }
 0x247   : > { %v1418_v59 = vmax.f32 %v1382_v55, 0.0  ;;  %v1911_v60 = vadd.f32 %v1910_v58, %v1909_v52  ;;  %v1473_v61 = vsel %vm1448_vm0, %v1440_v57, 0.0  ;;  %v1565_v52 = vadd.s32 4294967256, %v2651_v43 }
 0x248   : > { %v1912_v62 = vpop.f32.mrf.mxu1  ;;  %1474 = vadd.xlane.f32.xlu0 %v1473_v61  ;;  %v1540_v55 = vsub.s32 %v1537_v45, %v2549_v49  ;;  %v1547_v57 = vsub.s32 %v1544_v46, %v2549_v49  ;;  %v1572_v58 = vadd.s32 4294967248, %v2651_v43 }
 0x249   : > { %v1387_v63 = vadd.f32 %v1911_v60, %v2595_v47  ;;  %v1441_v0 = vmul.f32 %v2601_v56, %v1418_v59  ;;  %v1554_v59 = vsub.s32 %v1551_v54, %v2549_v49  ;;  %v1579_v60 = vadd.s32 4294967240, %v2651_v43 }
 0x24a   : > { %v1913_v1 = vpop.f32.mrf.mxu1 }
 0x24b   : > { %v1419_v2 = vmax.f32 %v1387_v63, 0.0  ;;  %v1914_v3 = vadd.f32 %v1913_v1, %v1912_v62  ;;  %v1476_v4 = vsel %vm1448_vm0, %v1441_v0, 0.0  ;;  %v1586_v63 = vadd.s32 4294967232, %v2651_v43 }
 0x24c   : > { %v1915_v5 = vpop.f32.mrf.mxu1  ;;  %1477 = vadd.xlane.f32.xlu1 %v1476_v4 }
 0x24d   : > { %v1390_v6 = vadd.f32 %v1914_v3, %v2595_v47  ;;  %v1442_v7 = vmul.f32 %v2601_v56, %v1419_v2  ;;  %v1568_v2 = vsub.s32 %v1565_v52, %v2549_v49  ;;  %v1593_v3 = vadd.s32 4294967224, %v2651_v43 }
 0x24e   : > { %v1916_v8 = vpop.f32.mrf.mxu1 }
 0x24f   : > { %v1420_v9 = vmax.f32 %v1390_v6, 0.0  ;;  %v1917_v10 = vadd.f32 %v1916_v8, %v1915_v5  ;;  %v1479_v11 = vsel %vm1448_vm0, %v1442_v7, 0.0  ;;  %v1575_v7 = vsub.s32 %v1572_v58, %v2549_v49 }
 0x250   : > { %v1918_v12 = vpop.f32.mrf.mxu1  ;;  %1480 = vadd.xlane.f32.xlu0 %v1479_v11 }
 0x251   : > { %v1395_v13 = vadd.f32 %v1917_v10, %v2595_v47  ;;  %v1443_v14 = vmul.f32 %v2601_v56, %v1420_v9  ;;  %v1582_v9 = vsub.s32 %v1579_v60, %v2549_v49  ;;  %v1600_v10 = vadd.s32 4294967216, %v2651_v43 }
 0x252   : > { %v1919_v15 = vpop.f32.mrf.mxu1 }
 0x253   : > { %v1421_v16 = vmax.f32 %v1395_v13, 0.0  ;;  %v1920_v17 = vadd.f32 %v1919_v15, %v1918_v12  ;;  %v1482_v18 = vsel %vm1448_vm0, %v1443_v14, 0.0  ;;  %v1589_v13 = vsub.s32 %v1586_v63, %v2549_v49 }
 0x254   : > { %v1921_v19 = vpop.f32.mrf.mxu1  ;;  %1483 = vadd.xlane.f32.xlu1 %v1482_v18  ;;  %v1607_v15 = vadd.s32 4294967208, %v2651_v43  ;;  %v1596_v18 = vsub.s32 %v1593_v3, %v2549_v49 }
 0x255   : > { %v1398_v20 = vadd.f32 %v1920_v17, %v2595_v47  ;;  %v1444_v21 = vmul.f32 %v2601_v56, %v1421_v16 }
 0x256   : > { %v1922_v22 = vpop.f32.mrf.mxu1 }
 0x257   : > { %v1422_v23 = vmax.f32 %v1398_v20, 0.0  ;;  %v1923_v24 = vadd.f32 %v1922_v22, %v1921_v19  ;;  %v1485_v25 = vsel %vm1448_vm0, %v1444_v21, 0.0 }
 0x258   : > { %v1924_v26 = vpop.f32.mrf.mxu1  ;;  %1486 = vadd.xlane.f32.xlu0 %v1485_v25 }
 0x259   : > { %v1403_v27 = vadd.f32 %v1923_v24, %v2595_v47  ;;  %v1445_v28 = vmul.f32 %v2601_v56, %v1422_v23  ;;  %v1614_v23 = vadd.s32 4294967200, %v2651_v43 }
 0x25a   : > { %v1925_v29 = vpop.f32.mrf.mxu1 }
 0x25b   : > { %v1423_v30 = vmax.f32 %v1403_v27, 0.0  ;;  %v1926_v31 = vadd.f32 %v1925_v29, %v1924_v26  ;;  %v1488_v32 = vsel %vm1448_vm0, %v1445_v28, 0.0  ;;  %v1603_v26 = vsub.s32 %v1600_v10, %v2549_v49 }
 0x25c   : > { %1489 = vadd.xlane.f32.xlu1 %v1488_v32  ;;  %v1621_v27 = vadd.s32 4294967192, %v2651_v43 }
 0x25d   : > { %v1406_v33 = vadd.f32 %v1926_v31, %v2595_v47  ;;  %v1446_v34 = vmul.f32 %v2601_v56, %v1423_v30  ;;  %v1610_v31 = vsub.s32 %v1607_v15, %v2549_v49 }
 0x25e   : > { %v1624_v45 = vsub.s32 %v1621_v27, %v2549_v49 }
 0x25f   : > { %v1424_v35 = vmax.f32 %v1406_v33, 0.0  ;;  %v1491_v36 = vsel %vm1448_vm0, %v1446_v34, 0.0 }
 0x260   : > { %1492 = vadd.xlane.f32.xlu0 %v1491_v36 }
 0x261   : > { %v1447_v37 = vmul.f32 %v2601_v56, %v1424_v35  ;;  %v1558_v56 = vadd.s32 4294967264, %v2651_v43 }
 0x263   : > { %v1494_v38 = vsel %vm1448_vm0, %v1447_v37, 0.0  ;;  %v1561_v62 = vsub.s32 %v1558_v56, %v2549_v49  ;;  %v1628_v37 = vadd.s32 4294967184, %v2651_v43 }
 0x264   : > { %1495 = vadd.xlane.f32.xlu1 %v1494_v38 }
 0x2b1   : > { %v1451_v39 = vpop.xlane.xlu0 %1450 }
 0x2b2   : > { %v1499_v5 = vadd.f32 %v2657_v50, %v1451_v39 }
 0x2b4   : > { %v1536_v20 = vrot.slane %v1499_v5, %v1535_v51 }
 0x2b5   : > { %v1454_v41 = vpop.xlane.xlu0 %1453 }
 0x2b6   : > { %v1500_v61 = vadd.f32 %v2657_v50, %v1454_v41  ;;  %v1617_v41 = vsub.s32 %v1614_v23, %v2549_v49 }
 0x2b8   : > { %v1541_v11 = vrot.slane %v1500_v61, %v1540_v55 }
 0x2b9   : > { %v1457_v40 = vpop.xlane.xlu1 %1456 }
 0x2ba   : > { %v1501_v1 = vadd.f32 %v2657_v50, %v1457_v40  ;;  %v1543_v28 = vsel %vm1542_vm1, %v1541_v11, %v1536_v20 }
 0x2bc   : > { %v1548_v16 = vrot.slane %v1501_v1, %v1547_v57 }
 0x2bd   : > { %v1460_v42 = vpop.xlane.xlu1 %1459 }
 0x2be   : > { %v1502_v6 = vadd.f32 %v2657_v50, %v1460_v42  ;;  %v1550_v33 = vsel %vm1549_vm2, %v1548_v16, %v1543_v28 }
 0x2c0   : > { %v1555_v21 = vrot.slane %v1502_v6, %v1554_v59 }
 0x2c1   : > { %v1463_v47 = vpop.xlane.xlu0 %1462 }
 0x2c2   : > { %v1503_v8 = vadd.f32 %v2657_v50, %v1463_v47  ;;  %v1557_v38 = vsel %vm1556_vm3, %v1555_v21, %v1550_v33 }
 0x2c4   : > { %v1562_v24 = vrot.slane %v1503_v8, %v1561_v62 }
 0x2c5   : > { %v1466_v44 = vpop.xlane.xlu1 %1465 }
 0x2c6   : > { %v1504_v12 = vadd.f32 %v2657_v50, %v1466_v44  ;;  %v1564_v42 = vsel %vm1563_vm4, %v1562_v24, %v1557_v38 }
 0x2c8   : > { %v1569_v29 = vrot.slane %v1504_v12, %v1568_v2 }
 0x2c9   : > { %v1469_v53 = vpop.xlane.xlu0 %1468 }
 0x2ca   : > { %v1505_v17 = vadd.f32 %v2657_v50, %v1469_v53  ;;  %v1571_v46 = vsel %vm1570_vm5, %v1569_v29, %v1564_v42  ;;  %v1635_v53 = vadd.s32 4294967176, %v2651_v43 }
 0x2cc   : > { %v1576_v34 = vrot.slane %v1505_v17, %v1575_v7  ;;  %v1638_v63 = vsub.s32 %v1635_v53, %v2549_v49 }
 0x2cd   : > { %v1472_v48 = vpop.xlane.xlu1 %1471 }
 0x2ce   : > { %v1506_v22 = vadd.f32 %v2657_v50, %v1472_v48  ;;  %v1578_v51 = vsel %vm1577_vm6, %v1576_v34, %v1571_v46  ;;  %v1631_v48 = vsub.s32 %v1628_v37, %v2549_v49 }
 0x2d0   : > { %v1583_v39 = vrot.slane %v1506_v22, %v1582_v9 }
 0x2d1   : > { %v1475_v0 = vpop.xlane.xlu0 %1474 }
 0x2d2   : > { %v1507_v25 = vadd.f32 %v2657_v50, %v1475_v0  ;;  %v1585_v57 = vsel %vm1584_vm7, %v1583_v39, %v1578_v51 }
 0x2d4   : > { %v1590_v47 = vrot.slane %v1507_v25, %v1589_v13 }
 0x2d5   : > { %v1478_v4 = vpop.xlane.xlu1 %1477 }
 0x2d6   : > { %v1508_v30 = vadd.f32 %v2657_v50, %v1478_v4  ;;  %v1592_v60 = vsel %vm1591_vm8, %v1590_v47, %v1585_v57 }
 0x2d8   : > { %v1597_v54 = vrot.slane %v1508_v30, %v1596_v18 }
 0x2d9   : > { %v1481_v14 = vpop.xlane.xlu0 %1480 }
 0x2da   : > { %v1509_v35 = vadd.f32 %v2657_v50, %v1481_v14  ;;  %v1599_v43 = vsel %vm1598_vm9, %v1597_v54, %v1592_v60 }
 0x2dc   : > { %v1604_v52 = vrot.slane %v1509_v35, %v1603_v26 }
 0x2dd   : > { %v1484_v19 = vpop.xlane.xlu1 %1483 }
 0x2de   : > { %v1510_v40 = vadd.f32 %v2657_v50, %v1484_v19  ;;  %v1606_v0 = vsel %vm1605_vm10, %v1604_v52, %v1599_v43 }
 0x2e0   : > { %v1611_v58 = vrot.slane %v1510_v40, %v1610_v31 }
 0x2e1   : > { %v1487_v32 = vpop.xlane.xlu0 %1486 }
 0x2e2   : > { %v1511_v44 = vadd.f32 %v2657_v50, %v1487_v32  ;;  %v1613_v3 = vsel %vm1612_vm11, %v1611_v58, %v1606_v0 }
 0x2e4   : > { %v1618_v61 = vrot.slane %v1511_v44, %v1617_v41 }
 0x2e5   : > { %v1490_v36 = vpop.xlane.xlu1 %1489 }
 0x2e6   : > { %v1512_v56 = vadd.f32 %v2657_v50, %v1490_v36  ;;  %v1620_v5 = vsel %vm1619_vm12, %v1618_v61, %v1613_v3 }
 0x2e8   : > { %v1625_v62 = vrot.slane %v1512_v56, %v1624_v45 }
 0x2e9   : > { %v1493_v55 = vpop.xlane.xlu0 %1492 }
 0x2ea   : > { %v1513_v59 = vadd.f32 %v2657_v50, %v1493_v55  ;;  %v1627_v6 = vsel %vm1626_vm13, %v1625_v62, %v1620_v5 }
 0x2ec   : > { %v1632_v1 = vrot.slane %v1513_v59, %v1631_v48 }
 0x2ed   : > { %v1496_v2 = vpop.xlane.xlu1 %1495 }
 0x2ee   : > { %v1514_v4 = vadd.f32 %v2657_v50, %v1496_v2  ;;  %v1634_v8 = vsel %vm1633_vm14, %v1632_v1, %v1627_v6 }
 0x2f0   : > { %v1639_v7 = vrot.slane %v1514_v4, %v1638_v63 }
 0x2f2   : > { %v1641_v49 = vsel %vm1640_vm15, %v1639_v7, %v1634_v8 }
 0x2f3   : > { %1643 = vst [vmem:[%s312_s11] sm:$0x1] %v1641_v49 }
 0x2f4   : > { %2231 = shalt.err (!%p2228_p0)
}
 0x2f5   : > { %s2232_s20 = scalar_lea.hbm %s2716_s15, 16  ;;  %s2236_s21 = scalar_lea.hbm %s2760_s7, 32 }
 0x2f6   : > { %p2233_p5 = scmp.ne.s32.totalorder %s2716_s15, %s2232_s20  ;;  %p2237_p4 = scmp.lt.s32.totalorder %s2716_s15, %s2760_s7 }
 0x2f7   : > { %p2238_p6 = scmp.lt.s32.totalorder %s2236_s21, %s2232_s20 }
 0x2f8   : > { %p2234_p9 = pnand %p2233_p5, %p2776_p11 }
 0x2f9   : > { %p2239_p8 = por %p2238_p6, %p2237_p4 }
 0x2fa   : > { %p2235_p1 = pneg %p2234_p9 }
 0x2fc   : > { %p2240_p3 = pnand %p2239_p8, %p2235_p1 }
 0x2fe   : > { %2243 = shalt.err (!%p2240_p3)
}
 0x2ff   : > { %1949 = dma.vmem_to_hbm [thread:$0]  (%p2776_p11), %s1658_s8, 16, %s2716_s15, %s1645_s16  }
 0x300 PF: > { %s1669_s11 = sand.u32 1, %s2274_s26   ;;  %p2777_p7 = scmp.ne.s32.totalorder %s2766_s9, 0 }
 0x301   : > { %p2778_p12 = scmp.ge.s32.totalorder %s2286_s29, 2  ;;  %s1670_s10 = scalar_lea.sflag [#allocation5], %s1669_s11 }
 0x303   : > { %p1960_p10 = pnand %p2778_p12, %p2777_p7 }
 0x305   : > { %p1961_p2 = pneg %p1960_p10 }
 0x307   : > { %2269 = dma.done.wait (%p1961_p2), %s1670_s10, 16  }
 0x308   : > { %2271 = vsyncadd (%p1961_p2), %s1670_s10, 4294967280  ;;  %p22_p13 = scmp.ge.s32.totalorder %s2392_s14, 4   ;;  %s2779_s26 = smov %s2278_s27 }
 0x309   : > { %s2780_s27 = smov %s2282_s28  ;;  %s2781_s28 = smov %s2409_s22 }
 0x30a   : > { %s2782_s29 = smov %s2392_s14  ;;  %24 = sbr.rel (!%p22_p13) target bundleno = 8 (0x8), region = 97 }
 0x30f   :  { %1674 = vsyncpa [#allocation4], 1 }
 0x310   :  { %1676 = vsyncpa [#allocation4 + $0x1], 1 }
 0x311   :  { %1677 = vsyncpa [#allocation7], 1 }
 0x312   :  { %1678 = vsyncpa [#allocation5], 1 }
 0x313   :  { %1680 = vsyncpa [#allocation5 + $0x1], 1 }

</bundles_post_ra>
